<compile_context>
chip_gen: v7x
topology: tpu7x:2x2x1
jax: 0.10.0
libtpu: 0.0.40
codegen_flags: <defaults>
</compile_context>

<pallas_src>
import math
import functools

import jax
import jax.numpy as jnp
from jax import lax
from jax.experimental import pallas as pl
from jax.experimental.pallas import tpu as pltpu


def _build_pe_table(d_model: int, max_len: int) -> jnp.ndarray:
    """Same construction as the PyTorch __init__ (buffer `pe`, shape (max_len, d_model))."""
    position = jnp.arange(0.0, max_len, dtype=jnp.float32)[:, None]            # (max_len, 1)
    div_term = jnp.exp(
        jnp.arange(0.0, d_model, 2.0, dtype=jnp.float32)
        * -(math.log(10000.0) / d_model)
    )                                                                          # (d_model/2,)
    angles = position * div_term                                               # (max_len, d_model/2)
    pe = jnp.zeros((max_len, d_model), dtype=jnp.float32)
    pe = pe.at[:, 0::2].set(jnp.sin(angles))
    pe = pe.at[:, 1::2].set(jnp.cos(angles))
    return pe


def _mix32(x):
    """'lowbias32' uint32 finalizer — plain VPU int ops (xor/shift/mul), portable."""
    x = x ^ (x >> 16)
    x = x * jnp.uint32(0x7FEB352D)
    x = x ^ (x >> 15)
    x = x * jnp.uint32(0x846CA68B)
    x = x ^ (x >> 16)
    return x


def _pos_enc_kernel(seed_ref, x_ref, pe_ref, o_ref, *,
                    keep_threshold: int, inv_keep: float, seq_tile: int):
    # seed_ref : SMEM (1,) int32  (scalar prefetch)
    # x_ref/o_ref : (1, TS, D) block for one (seq_tile, batch) grid step
    # pe_ref      : (TS, D)    block, constant across the inner batch axis
    y = x_ref[...] + pe_ref[...][None, :, :]            # broadcast add, input dtype

    if keep_threshold > 0:                               # dropout active (trace-time branch)
        s = pl.program_id(0)                             # seq-tile index
        b = pl.program_id(1)                             # batch index
        shape = y.shape
        # Unique per-element counter: (global_row, col, batch, seed) -> uint32 bits.
        row = lax.broadcasted_iota(jnp.uint32, shape, 1) + (s * seq_tile).astype(jnp.uint32)
        col = lax.broadcasted_iota(jnp.uint32, shape, 2)
        h = row * jnp.uint32(0x9E3779B1) + col
        h = _mix32(h)
        h = h + b.astype(jnp.uint32) * jnp.uint32(0x85EBCA77) + seed_ref[0].astype(jnp.uint32)
        bits = _mix32(h)
        # Inverted dropout: keep with prob (1-p) via integer threshold compare.
        keep = bits >= jnp.uint32(keep_threshold)
        y = jnp.where(keep, y * jnp.asarray(inv_keep, dtype=y.dtype), jnp.zeros_like(y))

    o_ref[...] = y


def _pick_seq_tile(seq_len: int, d_model: int, itemsize: int,
                   target_bytes: int = 2 * 1024 * 1024) -> int:
    """Pick a seq-tile so one (TS, D) block is ~2 MiB (multiple of 8, or full S)."""
    rows = max(8, target_bytes // max(1, d_model * itemsize))
    rows = (rows // 8) * 8
    return seq_len if rows >= seq_len else rows


def positional_encoding_forward(x, pe_table, *, dropout_p: float,
                                training: bool = True, seed: int = 0):
    """x: (B, S, D).  pe_table: (max_len, D)."""
    B, S, D = x.shape
    max_len = pe_table.shape[0]
    if S > max_len:
        raise ValueError(f"seq_len {S} exceeds max_len {max_len}")

    pe_slice = pe_table[:S, :].astype(x.dtype)           # pe[:, :x.size(1)], compute dtype
    p = float(dropout_p) if training else 0.0
    if not (0.0 <= p < 1.0):
        raise ValueError("dropout_p must be in [0, 1)")
    keep_threshold = min(int(round(p * 2**32)), 2**32 - 1) if p > 0.0 else 0
    inv_keep = 1.0 / (1.0 - p) if p > 0.0 else 1.0

    ts = _pick_seq_tile(S, D, x.dtype.itemsize)
    num_s_tiles = -(-S // ts)                            # ceil-div; ragged tail is clipped

    kernel = functools.partial(
        _pos_enc_kernel,
        keep_threshold=keep_threshold,
        inv_keep=inv_keep,
        seq_tile=ts,
    )
    seed_arr = jnp.asarray([int(seed)], dtype=jnp.int32)

    # TODO(synk): for d_model < 128 a lane-dense (B*S, 128k) reshape would avoid
    # masked partial stores; kept 3-D here since real d_model (512/1024) is already
    # lane-dense and the pe broadcast stays trivial.
    return pl.pallas_call(
        kernel,
        out_shape=jax.ShapeDtypeStruct((B, S, D), x.dtype),
        grid_spec=pltpu.PrefetchScalarGridSpec(
            num_scalar_prefetch=1,
            # Seq tiles outer, batch inner: pe's block index is constant across the
            # inner axis, so its DMA is issued once per seq tile, not per (s, b) step.
            grid=(num_s_tiles, B),
            in_specs=[
                pl.BlockSpec((1, ts, D), lambda s, b, seed: (b, s, 0)),   # x block
                pl.BlockSpec((ts, D), lambda s, b, seed: (s, 0)),         # pe block
            ],
            out_specs=pl.BlockSpec((1, ts, D), lambda s, b, seed: (b, s, 0)),
        ),
        compiler_params=pltpu.CompilerParams(
            dimension_semantics=("parallel", "parallel"),   # stateless hash -> independent steps
        ),
    )(seed_arr, x, pe_slice)


if __name__ == "__main__":
    # Small shapes consistent with the module: batch=2, seq=8, d_model=32
    B, S, D = 2, 8, 32
    MAX_LEN = 64
    DROPOUT_P = 0.1

    key = jax.random.PRNGKey(0)
    x = jax.random.normal(key, (B, S, D), dtype=jnp.float32)
    pe_table = _build_pe_table(D, MAX_LEN)

    # Training-mode forward (dropout active, deterministic seed).
    out_train = positional_encoding_forward(
        x, pe_table, dropout_p=DROPOUT_P, training=True, seed=1234
    )
    out_train = jax.block_until_ready(out_train)

    # Eval-mode forward (dropout = identity) -> exact check against pure-JAX reference.
    out_eval = positional_encoding_forward(
        x, pe_table, dropout_p=DROPOUT_P, training=False
    )
    out_eval = jax.block_until_ready(out_eval)

    ref_eval = x + pe_table[None, :S, :]
    assert out_eval.shape == (B, S, D)
    assert jnp.allclose(out_eval, ref_eval, atol=1e-6), "eval-mode mismatch"

    # Sanity: training output entries are either 0 (dropped) or scaled reference values.
    scaled = ref_eval / (1.0 - DROPOUT_P)
    ok = jnp.logical_or(jnp.isclose(out_train, 0.0, atol=1e-6),
                        jnp.isclose(out_train, scaled, atol=1e-5, rtol=1e-5))
    assert bool(jnp.all(ok)), "training-mode dropout values inconsistent"

    print("KERNEL_OK")
</pallas_src>

<mosaic_0001>
module attributes {stable_mosaic.version = 11 : i64} {
  func.func @_pos_enc_kernel(%arg0: i32, %arg1: i32, %arg2: memref<1xi32, #tpu.memory_space<smem>>, %arg3: memref<1x8x32xf32, #tpu.memory_space<vmem>>, %arg4: memref<8x32xf32, #tpu.memory_space<vmem>>, %arg5: memref<1x8x32xf32, #tpu.memory_space<vmem>>) attributes {dimension_semantics = [#tpu.dimension_semantics<parallel>, #tpu.dimension_semantics<parallel>], iteration_bounds = array<i64: 1, 2>, scalar_prefetch = 1 : i64, scratch_operands = 0 : i64, tpu.core_type = #tpu.core_type<tc>, window_params = [{transform_indices = @transform_0, window_bounds = array<i64: 1, 8, 32>}, {transform_indices = @transform_1, window_bounds = array<i64: 8, 32>}, {transform_indices = @transform_2, window_bounds = array<i64: 1, 8, 32>}]} {
    %c0 = arith.constant 0 : index
    %c0_0 = arith.constant 0 : index
    %c0_1 = arith.constant 0 : index
    %0 = vector.load %arg3[%c0, %c0_0, %c0_1] : memref<1x8x32xf32, #tpu.memory_space<vmem>>, vector<1x8x32xf32>
    %c0_2 = arith.constant 0 : index
    %c0_3 = arith.constant 0 : index
    %1 = vector.load %arg4[%c0_2, %c0_3] : memref<8x32xf32, #tpu.memory_space<vmem>>, vector<8x32xf32>
    %2 = vector.shape_cast %1 : vector<8x32xf32> to vector<1x8x32xf32>
    %3 = arith.addf %0, %2 : vector<1x8x32xf32>
    %4 = tpu.iota {dimensions = array<i32: 1>} : vector<1x8x32xi32>
    %c8_i32 = arith.constant 8 : i32
    %5 = arith.muli %arg0, %c8_i32 : i32
    %6 = vector.broadcast %5 : i32 to vector<1x8x32xi32>
    %7 = arith.addi %4, %6 : vector<1x8x32xi32>
    %8 = tpu.iota {dimensions = array<i32: 2>} : vector<1x8x32xi32>
    %c-1640531535_i32 = arith.constant -1640531535 : i32
    %9 = vector.broadcast %c-1640531535_i32 : i32 to vector<1x8x32xi32>
    %10 = arith.muli %7, %9 : vector<1x8x32xi32>
    %11 = arith.addi %10, %8 : vector<1x8x32xi32>
    %c16_i32 = arith.constant 16 : i32
    %12 = vector.broadcast %c16_i32 : i32 to vector<1x8x32xi32>
    %13 = arith.shrui %11, %12 : vector<1x8x32xi32>
    %14 = arith.xori %11, %13 : vector<1x8x32xi32>
    %c2146121005_i32 = arith.constant 2146121005 : i32
    %15 = vector.broadcast %c2146121005_i32 : i32 to vector<1x8x32xi32>
    %16 = arith.muli %14, %15 : vector<1x8x32xi32>
    %c15_i32 = arith.constant 15 : i32
    %17 = vector.broadcast %c15_i32 : i32 to vector<1x8x32xi32>
    %18 = arith.shrui %16, %17 : vector<1x8x32xi32>
    %19 = arith.xori %16, %18 : vector<1x8x32xi32>
    %c-2073254261_i32 = arith.constant -2073254261 : i32
    %20 = vector.broadcast %c-2073254261_i32 : i32 to vector<1x8x32xi32>
    %21 = arith.muli %19, %20 : vector<1x8x32xi32>
    %c16_i32_4 = arith.constant 16 : i32
    %22 = vector.broadcast %c16_i32_4 : i32 to vector<1x8x32xi32>
    %23 = arith.shrui %21, %22 : vector<1x8x32xi32>
    %24 = arith.xori %21, %23 : vector<1x8x32xi32>
    %c-2048144777_i32 = arith.constant -2048144777 : i32
    %25 = arith.muli %arg1, %c-2048144777_i32 : i32
    %26 = vector.broadcast %25 : i32 to vector<1x8x32xi32>
    %27 = arith.addi %24, %26 : vector<1x8x32xi32>
    %c0_5 = arith.constant 0 : index
    %28 = memref.load %arg2[%c0_5] : memref<1xi32, #tpu.memory_space<smem>>
    %29 = vector.broadcast %28 : i32 to vector<1x8x32xi32>
    %30 = arith.addi %27, %29 : vector<1x8x32xi32>
    %c16_i32_6 = arith.constant 16 : i32
    %31 = vector.broadcast %c16_i32_6 : i32 to vector<1x8x32xi32>
    %32 = arith.shrui %30, %31 : vector<1x8x32xi32>
    %33 = arith.xori %30, %32 : vector<1x8x32xi32>
    %c2146121005_i32_7 = arith.constant 2146121005 : i32
    %34 = vector.broadcast %c2146121005_i32_7 : i32 to vector<1x8x32xi32>
    %35 = arith.muli %33, %34 : vector<1x8x32xi32>
    %c15_i32_8 = arith.constant 15 : i32
    %36 = vector.broadcast %c15_i32_8 : i32 to vector<1x8x32xi32>
    %37 = arith.shrui %35, %36 : vector<1x8x32xi32>
    %38 = arith.xori %35, %37 : vector<1x8x32xi32>
    %c-2073254261_i32_9 = arith.constant -2073254261 : i32
    %39 = vector.broadcast %c-2073254261_i32_9 : i32 to vector<1x8x32xi32>
    %40 = arith.muli %38, %39 : vector<1x8x32xi32>
    %c16_i32_10 = arith.constant 16 : i32
    %41 = vector.broadcast %c16_i32_10 : i32 to vector<1x8x32xi32>
    %42 = arith.shrui %40, %41 : vector<1x8x32xi32>
    %43 = arith.xori %40, %42 : vector<1x8x32xi32>
    %c429496730_i32 = arith.constant 429496730 : i32
    %44 = vector.broadcast %c429496730_i32 : i32 to vector<1x8x32xi32>
    %45 = arith.cmpi uge, %43, %44 : vector<1x8x32xi32>
    %cst = arith.constant 1.11111116 : f32
    %46 = vector.broadcast %cst : f32 to vector<1x8x32xf32>
    %47 = arith.mulf %3, %46 : vector<1x8x32xf32>
    %cst_11 = arith.constant 0.000000e+00 : f32
    %48 = vector.broadcast %cst_11 : f32 to vector<1x8x32xf32>
    %49 = arith.select %45, %47, %48 : vector<1x8x32xi1>, vector<1x8x32xf32>
    %c0_12 = arith.constant 0 : index
    %c0_13 = arith.constant 0 : index
    %c0_14 = arith.constant 0 : index
    %50 = vector.load %arg5[%c0_12, %c0_13, %c0_14] : memref<1x8x32xf32, #tpu.memory_space<vmem>>, vector<1x8x32xf32>
    tpu.vector_store %arg5[%c0_12, %c0_13, %c0_14], %49 {strides = array<i32>} : memref<1x8x32xf32, #tpu.memory_space<vmem>>, vector<1x8x32xf32>,
    return
  }
  func.func @transform_0(%arg0: i32, %arg1: i32, %arg2: memref<1xi32, #tpu.memory_space<smem>>) -> (i32, i32, i32) {
    %c0_i32 = arith.constant 0 : i32
    %c0_i32_0 = arith.constant 0 : i32
    return %arg1, %arg0, %c0_i32 : i32, i32, i32
  }
  func.func @transform_1(%arg0: i32, %arg1: i32, %arg2: memref<1xi32, #tpu.memory_space<smem>>) -> (i32, i32) {
    %c0_i32 = arith.constant 0 : i32
    %c0_i32_0 = arith.constant 0 : i32
    return %arg0, %c0_i32 : i32, i32
  }
  func.func @transform_2(%arg0: i32, %arg1: i32, %arg2: memref<1xi32, #tpu.memory_space<smem>>) -> (i32, i32, i32) {
    %c0_i32 = arith.constant 0 : i32
    %c0_i32_0 = arith.constant 0 : i32
    return %arg1, %arg0, %c0_i32 : i32, i32, i32
  }
}

</mosaic_0001>

<bundles_post_ra>
// kernel: tpu_custom_call.1
= control target key start
LH: loop header
LB: loop body
LE: loop exit
PB: predicated region body
PF: predicated region fallthrough
CT: control target
= control target key end

     0   :  { %s825_s0 = inlined_call_operand.<no memory space> [shape: s32[1], index: 0, kind: input, shape index: {}]   ;;  %s826_s1 = inlined_call_operand.hbm [shape: f32[2,8,32], index: 1, kind: input, shape index: {}]   ;;  %s827_s2 = inlined_call_operand.hbm [shape: f32[8,32], index: 2, kind: input, shape index: {}]   ;;  %s828_s3 = inlined_call_operand.hbm [shape: f32[2,8,32], index: 3, kind: output, shape index: {}]  }
   0x1   :  { %8 = sst [smem:[#allocation3]] %s825_s0 }
   0x2   :  { %9 = vsyncpa [#allocation5], 0 }
   0x3   :  { %11 = vsyncpa [#allocation5 + $0x1], 0 }
   0x4   :  { %12 = vsyncpa [#allocation8], 0 }
   0x5   :  { %13 = vsyncpa [#allocation6], 0 }
   0x6   :  { %15 = vsyncpa [#allocation6 + $0x1], 0  ;;  %s604_s14 = smov 0   ;;  %s606_s15 = smov 0  }
   0x7   :  { %s608_s16 = smov 0   ;;  %s610_s17 = smov 0  }
   0x8   :  { %s612_s18 = smov 0   ;;  %s614_s19 = smov 0  }
   0x9 LB: > { %s344_s0 = sadd.s32 4294967295, %s576_s19   ;;  %s345_s20 = sadd.s32 4294967294, %s576_s19   ;;  %s576_s19 = sphi %s614_s19, %s21_s19   ;;  %s572_s18 = sphi %s612_s18, %s853_s18   ;;  %s568_s17 = sphi %s610_s17, %s852_s17   ;;  %s564_s16 = sphi %s608_s16, %s851_s16   ;;  %s560_s15 = sphi %s606_s15, %s850_s15   ;;  %s556_s14 = sphi %s604_s14, %s849_s14  }
   0xa   : > { %p55_p0 = scmp.ne.s32.totalorder %s560_s15, %s556_s14  ;;  %p638_p1 = scmp.eq.s32.totalorder %s344_s0, 0 }
   0xb   : > { %p642_p2 = scmp.eq.s32.totalorder %s344_s0, 1  ;;  %p113_p3 = scmp.eq.s32.totalorder %s345_s20, 1 }
   0xc   : > { %s833_s21 = scalar_select %p638_p1, 1, 0 }
   0xd   : > { %s834_s22 = scalar_select %p642_p2, 1, 0 }
   0xe   : > { %p648_p4 = por %p638_p1, %p55_p0  ;;  %p346_p5 = scmp.ge.s32.totalorder %s576_s19, 1 }
   0xf   : > { %p653_p6 = por %p113_p3, %p55_p0  ;;  %p120_p7 = scmp.lt.s32.totalorder %s576_s19, 3 }
  0x10   : > { %s835_s23 = scalar_select %p648_p4, 1, 0 }
  0x11   : > { %s836_s24 = scalar_select %p653_p6, 1, 0 }
  0x12   : > { %p658_p8 = pnand %p346_p5, %p120_p7  ;;  %s578_s26 = smov [#allocation7]  }
  0x13   : > { %s135_s27 = sshll.u32 %s578_s26, 4  ;;  %s30_s29 = sadd.s32 1, %s572_s18  ;;  %s136_s27 = int_to_ptr.vmem [resolvable:$true] %s135_s27 }
  0x14   : > { %s837_s25 = scalar_select %p658_p8, 1, 0 }
  0x15   : > { %p367_p10 = pneg %p658_p8  ;;  %s42_s30 = sadd.s32 1, %s564_s16 }
  0x16   : > { %p673_p12 = scmp.ge.s32.totalorder %s30_s29, 2  ;;  %s432_s7 = scalar_lea.hbm %s827_s2, 128 }
  0x17   : > { %p667_p11 = pnand %p367_p10, %p638_p1  ;;  %p433_p13 = scmp.ne.s32.totalorder %s827_s2, %s432_s7 }
  0x18   : > { %s839_s4 = scalar_select %p673_p12, 1, 0 }
  0x19   : > { %p434_p0 = pneg %p667_p11  ;;  %p439_p7 = scmp.lt.u32.totalorder %s432_s7, %s827_s2 }
  0x1b   : > { %p435_p3 = pnand %p434_p0, %p433_p13 }
  0x1d   : > { %p436_p5 = pneg %p435_p3 }
  0x1f   : > { %p441_p10 = pnand %p439_p7, %p436_p5 }
  0x21   : > { %444 = shalt.err (!%p441_p10)
}
  0x22   : > { %s445_s12 = scalar_lea.vmem %s136_s27, 128  ;;  %p453_p4 = scmp.lt.s32.totalorder %s136_s27, %s136_s27 }
  0x23   : > { %p446_p9 = scmp.ne.s32.totalorder %s136_s27, %s445_s12  ;;  %p454_p8 = scmp.lt.s32.totalorder %s445_s12, %s445_s12 }
  0x25   : > { %p448_p6 = pnand %p446_p9, %p434_p0  ;;  %p455_p2 = por %p454_p8, %p453_p4 }
  0x27   : > { %p449_p1 = pneg %p448_p6 }
  0x29   : > { %p456_p12 = pnand %p455_p2, %p449_p1 }
  0x2b   : > { %459 = shalt.err (!%p456_p12)
}
  0x2c   : > { %370 = dma.hbm_to_vmem [thread:$0]  (!%p667_p11), %s827_s2, 128, %s136_s27, [#allocation8]  }
  0x2d   : > { %p840_p4 = scmp.ne.s32.totalorder %s839_s4, 0  ;;  %p49_p1 = scmp.ne.s32.totalorder %s564_s16, %s560_s15 }
  0x2e   : > { %p50_p2 = scmp.eq.s32.totalorder %s576_s19, 0  ;;  %p380_p6 = scmp.lt.s32.totalorder %s576_s19, 2 }
  0x2f   : > { %s855_s29 = smov (%p840_p4, %s30_s29), 0  ;;  %p841_p12 = scmp.ne.s32.totalorder %s834_s22, 0 }
  0x30   : > { %s37_s20 = ssub.s32 %s572_s18, %s855_s29  ;;  %p51_p9 = por %p50_p2, %p49_p1 }
  0x31   : > { %p40_p8 = scmp.eq.s32.totalorder %s37_s20, 0  ;;  %p705_p13 = por %p841_p12, %p49_p1 }
  0x32   : > { %s146_s28 = sand.u32 1, %s564_s16   ;;  %s350_s4 = sshll.u32 %s572_s18, 7 }
  0x33   : > { %s713_s5 = scalar_select %p40_p8, %s564_s16, %s42_s30  }
  0x34   : > { %s349_s27 = sshll.u32 %s146_s28, 3  ;;  %s719_s8 = scalar_lea.hbm %s826_s1, %s350_s4 }
  0x35   : > { %s150_s22 = scalar_lea.vmem [#allocation4], %s349_s27  ;;  %p723_p11 = pnand %p380_p6, %p51_p9 }
  0x36   : > { %s158_s9 = sshll.u32 %s150_s22, 4  ;;  %s147_s30 = scalar_lea.sflag [#allocation5], %s146_s28  ;;  %s721_s9 = int_to_ptr.vmem [resolvable:$true] %s158_s9 }
  0x37   : > { %s460_s11 = scalar_lea.hbm %s719_s8, 128  ;;  %p462_p3 = pneg %p723_p11 }
  0x38   : > { %p461_p0 = scmp.ne.s32.totalorder %s719_s8, %s460_s11  ;;  %s465_s0 = scalar_lea.hbm %s826_s1, 256 }
  0x39   : > { %p466_p10 = scmp.lt.u32.totalorder %s719_s8, %s826_s1  ;;  %p467_p4 = scmp.lt.u32.totalorder %s465_s0, %s460_s11 }
  0x3a   : > { %p463_p5 = pnand %p462_p3, %p461_p0  ;;  %p469_p2 = scmp.lt.u32.totalorder %s460_s11, %s719_s8 }
  0x3b   : > { %p468_p1 = por %p467_p4, %p466_p10 }
  0x3c   : > { %p464_p7 = pneg %p463_p5 }
  0x3d   : > { %p470_p6 = por %p469_p2, %p468_p1 }
  0x3f   : > { %p471_p8 = pnand %p470_p6, %p464_p7 }
  0x41   : > { %474 = shalt.err (!%p471_p8)
}
  0x42   : > { %s475_s28 = scalar_lea.vmem %s721_s9, 128  ;;  %s579_s4 = smov [#allocation4]  }
  0x43   : > { %p476_p9 = scmp.ne.s32.totalorder %s721_s9, %s475_s28  ;;  %s480_s6 = sshll.u32 %s579_s4, 4  ;;  %s481_s6 = int_to_ptr.vmem [resolvable:$false] %s480_s6 }
  0x44   : > { %s482_s7 = scalar_lea.vmem %s481_s6, 256  ;;  %p483_p5 = scmp.lt.s32.totalorder %s721_s9, %s481_s6 }
  0x45   : > { %p478_p12 = pnand %p476_p9, %p462_p3  ;;  %p484_p10 = scmp.lt.s32.totalorder %s482_s7, %s475_s28 }
  0x47   : > { %p479_p0 = pneg %p478_p12  ;;  %p485_p4 = por %p484_p10, %p483_p5 }
  0x49   : > { %p486_p1 = pnand %p485_p4, %p479_p0 }
  0x4b   : > { %489 = shalt.err (!%p486_p1)
}
  0x4c   : > { %374 = dma.hbm_to_vmem [thread:$0]  (!%p723_p11), %s719_s8, 128, %s721_s9, %s147_s30  }
  0x4d   : > { %p844_p7 = scmp.ne.s32.totalorder %s837_s25, 0 }
  0x4e   : > { %s755_s22 = sand.u32 (!%p844_p7), 1, %s560_s15   ;;  %p845_p3 = scmp.ne.s32.totalorder (!%p844_p7), %s835_s23, 0 }
  0x4f   : > { %167 = sbr.rel (%p844_p7) target bundleno = 150 (0x96), region = 28  ;;  %s352_s11 = sshll.u32 (!%p844_p7), %s755_s22, 3 }
  0x50   : > { %s170_s12 = scalar_lea.sflag (!%p844_p7), [#allocation5], %s755_s22  ;;  %s173_s13 = scalar_lea.vmem (!%p844_p7), [#allocation4], %s352_s11 }
  0x56   : > { %543 = dma.done.wait (%p845_p3), %s170_s12, 128  }
  0x57   : > { %545 = vsyncadd (%p845_p3), %s170_s12, 4294967168  ;;  %p846_p11 = scmp.ne.s32.totalorder %s833_s21, 0 }
  0x59   : > { %547 = dma.done.wait (%p846_p11), [#allocation8], 128  }
  0x5a   : > { %549 = vsyncadd (%p846_p11), [#allocation8], 4294967168  ;;  %v201_v0 = vlaneseq  ;;  %s221_s25 = sld [smem:[#allocation3]]  ;;  %s218_s23 = smul.u32 2246822519, %s568_s17  ;;  %v198_v20 = vld [vmem:[%s173_s13] sm:$0xff] }
  0x5b   : > { %v199_v21 = vld [vmem:[#allocation7] sm:$0xff]  ;;  %s197_s21 = scalar_lea.vmem [#allocation9], %s352_s11  ;;  %s356_s9 = sshll.u32 %s568_s17, 7  ;;  %vm235_vm0 = vcmask 261120  }
  0x5c   : > { %v202_v1 = vshrl.u32 %v201_v0, 7  ;;  %v207_v2 = vand.u32 127, %v201_v0  ;;  %v219_v12 = vstv %s218_s23  ;;  %v200_v24 = vadd.f32 %v199_v21, %v198_v20  ;;  %s252_s8 = sshll.u32 %s197_s21, 4  ;;  %s778_s0 = scalar_lea.hbm %s828_s3, %s356_s9  ;;  %s773_s8 = int_to_ptr.vmem [resolvable:$true] %s252_s8 }
  0x5d   : > { %s238_s20 = scalar_lea.sflag [#allocation6], %s755_s22  ;;  %s490_s27 = scalar_lea.vmem %s773_s8, 128 }
  0x5e   : > { %v208_v3 = vmul.u32 2654435761, %v202_v1  ;;  %v233_v27 = vmul.f32 1.1111112, %v200_v24  ;;  %p491_p2 = scmp.ne.s32.totalorder %s773_s8, %s490_s27  ;;  %s580_s17 = smov [#allocation9]  }
  0x5f   : > { %s494_s28 = sshll.u32 %s580_s17, 4  ;;  %s495_s28 = int_to_ptr.vmem [resolvable:$false] %s494_s28 }
  0x60   : > { %v209_v4 = vadd.s32 %v208_v3, %v207_v2  ;;  %v222_v14 = vstv %s221_s25  ;;  %p492_p6 = pnand %p491_p2, %p705_p13  ;;  %s496_s4 = scalar_lea.vmem %s495_s28, 256 }
  0x61   : > { %p497_p9 = scmp.lt.s32.totalorder %s773_s8, %s495_s28  ;;  %p498_p12 = scmp.lt.s32.totalorder %s496_s4, %s490_s27 }
  0x62   : > { %v210_v5 = vshrl.u32 %v209_v4, 16  ;;  %p493_p8 = pneg %p492_p6 }
  0x63   : > { %p499_p0 = por %p498_p12, %p497_p9 }
  0x64   : > { %v211_v6 = vxor.u32 %v210_v5, %v209_v4 }
  0x65   : > { %p500_p5 = pnand %p499_p0, %p493_p8 }
  0x66   : > { %v212_v7 = vmul.u32 2146121005, %v211_v6 }
  0x68   : > { %v213_v8 = vshrl.u32 %v212_v7, 15 }
  0x6a   : > { %v214_v9 = vxor.u32 %v213_v8, %v212_v7 }
  0x6c   : > { %v215_v10 = vmul.u32 2221713035, %v214_v9 }
  0x6e   : > { %v216_v11 = vshrl.u32 %v215_v10, 16 }
  0x70   : > { %v217_v13 = vxor.u32 %v216_v11, %v215_v10 }
  0x72   : > { %v220_v15 = vadd.s32 %v219_v12, %v217_v13 }
  0x74   : > { %v223_v16 = vadd.s32 %v222_v14, %v220_v15 }
  0x76   : > { %v224_v17 = vshrl.u32 %v223_v16, 16 }
  0x78   : > { %v225_v18 = vxor.u32 %v224_v17, %v223_v16 }
  0x7a   : > { %v226_v19 = vmul.u32 2146121005, %v225_v18 }
  0x7c   : > { %v227_v22 = vshrl.u32 %v226_v19, 15 }
  0x7e   : > { %v228_v23 = vxor.u32 %v227_v22, %v226_v19 }
  0x80   : > { %v229_v25 = vmul.u32 2221713035, %v228_v23 }
  0x82   : > { %v230_v26 = vshrl.u32 %v229_v25, 16 }
  0x84   : > { %v231_v28 = vxor.u32 %v230_v26, %v229_v25 }
  0x86   : > { %vm232_vm1 = vcmp.ge.u32.totalorder %v231_v28, 429496730 }
  0x87   : > { %v234_v29 = vsel %vm232_vm1, %v233_v27, 0.0 }
  0x88   : > { %236 = vst.msk [vmem:[%s197_s21] sm:$0xff] %vm235_vm0, %v234_v29 }
  0x89   : > { %503 = shalt.err (!%p500_p5)
}
  0x8a   : > { %s504_s6 = scalar_lea.hbm %s778_s0, 128  ;;  %s508_s11 = scalar_lea.hbm %s828_s3, 256 }
  0x8b   : > { %p505_p10 = scmp.ne.s32.totalorder %s778_s0, %s504_s6  ;;  %p509_p7 = scmp.lt.u32.totalorder %s778_s0, %s828_s3 }
  0x8c   : > { %p510_p3 = scmp.lt.u32.totalorder %s508_s11, %s504_s6  ;;  %p512_p2 = scmp.lt.u32.totalorder %s504_s6, %s778_s0 }
  0x8d   : > { %p506_p4 = pnand %p505_p10, %p705_p13 }
  0x8e   : > { %p511_p11 = por %p510_p3, %p509_p7 }
  0x8f   : > { %p507_p1 = pneg %p506_p4 }
  0x90   : > { %p513_p6 = por %p512_p2, %p511_p11 }
  0x92   : > { %p514_p8 = pnand %p513_p6, %p507_p1 }
  0x94   : > { %517 = shalt.err (!%p514_p8)
}
  0x95   : > { %365 = dma.vmem_to_hbm [thread:$0]  (%p705_p13), %s773_s8, 128, %s778_s0, %s238_s20  }
  0x96 PF: > { %s264_s25 = sand.u32 1, %s556_s14   ;;  %p847_p9 = scmp.ne.s32.totalorder %s836_s24, 0 }
  0x97   : > { %p848_p12 = scmp.ge.s32.totalorder %s576_s19, 2  ;;  %s265_s23 = scalar_lea.sflag [#allocation6], %s264_s25 }
  0x99   : > { %p376_p0 = pnand %p848_p12, %p847_p9 }
  0x9b   : > { %551 = dma.done.wait (!%p376_p0), %s265_s23, 128  }
  0x9c   : > { %553 = vsyncadd (!%p376_p0), %s265_s23, 4294967168  ;;  %s21_s19 = sadd.s32 1, %s576_s19   ;;  %s849_s14 = smov %s560_s15 }
  0x9d   : > { %p18_p5 = scmp.ge.s32.totalorder %s21_s19, 4   ;;  %s850_s15 = smov %s564_s16 }
  0x9e   : > { %s851_s16 = smov %s713_s5  ;;  %s852_s17 = smov %s572_s18 }
  0x9f   : > { %s853_s18 = smov %s855_s29  ;;  %20 = sbr.rel (!%p18_p5) target bundleno = 9 (0x9), region = 78 }
  0xa6   :  { %270 = vsyncpa [#allocation5], 1 }
  0xa7   :  { %272 = vsyncpa [#allocation5 + $0x1], 1 }
  0xa8   :  { %273 = vsyncpa [#allocation8], 1 }
  0xa9   :  { %274 = vsyncpa [#allocation6], 1 }
  0xaa   :  { %276 = vsyncpa [#allocation6 + $0x1], 1 }

</bundles_post_ra>
